<compile_context>
chip_gen: v7x
topology: tpu7x:2x2x1
jax: 0.10.0
libtpu: 0.0.40
codegen_flags: <defaults>
</compile_context>

<pallas_src>
import jax
import jax.numpy as jnp
from jax import lax
from jax.experimental import pallas as pl
from jax.experimental.pallas import tpu as pltpu


_TN_CAP = 512            # sublane-dim tile cap (multiple of 8)
_TM_CAP = 1024           # lane-dim tile cap (multiple of 128)
_VMEM_BUDGET = 24 << 20  # target per-step working set (double-buffered)


def _cdiv(a, b):
    return -(-a // b)


def _round_up(v, mult):
    return _cdiv(v, mult) * mult


def _tile_bytes(tn, tm, d, in_bytes, out_bytes):
    # Double-buffered input/output tiles + f32 matmul/exponent intermediates.
    return 2 * (tn * d * in_bytes + d * tm * in_bytes + tn * tm * out_bytes) + 4 * tn * tm


def _choose_tiles(B, n, m, d, in_bytes, out_bytes):
    # Full-dim blocks are always layout-legal; otherwise keep TN a multiple of 8
    # and TM a multiple of 128 so the (8,128) constraint holds on every block.
    TN = n if n <= _TN_CAP else _TN_CAP
    TM = m if m <= _TM_CAP else _TM_CAP
    while _tile_bytes(TN, TM, d, in_bytes, out_bytes) > _VMEM_BUDGET:
        if TM > 128 and TM >= TN:
            TM = max(128, (TM // 2) // 128 * 128)
        elif TN > 8:
            TN = max(8, (TN // 2) // 8 * 8)
        else:
            break
    # v7x has 2 TensorCores: make sure some parallel grid axis has >= 2 steps.
    if B * _cdiv(n, TN) * _cdiv(m, TM) == 1:
        if m >= 256:
            TM = _round_up(_cdiv(m, 2), 128)
        elif n >= 16:
            TN = _round_up(_cdiv(n, 2), 8)
    return TN, TM


def _rbf_kernel_body(params_ref, x_ref, yt_ref, o_ref):
    # params_ref: SMEM f32[2] = [c, sigma_var], with c = -0.5 / length_scale (c <= 0).
    c = params_ref[0]
    sigma_var = params_ref[1]

    x = x_ref[...].astype(jnp.float32)      # (TN, d)
    yt = yt_ref[...].astype(jnp.float32)    # (d, TM)  -- MXU-native (K, N) layout

    # MXU: (-2c * x) @ y^T, contracting over d (RHS already lane-dense on m).
    xs = x * (-2.0 * c)
    xy = lax.dot_general(xs, yt, (((1,), (0,)), ((), ())),
                         preferred_element_type=jnp.float32)          # (TN, TM)

    cxn = c * jnp.sum(x * x, axis=1, keepdims=True)                   # (TN, 1)
    cyn = c * jnp.sum(yt * yt, axis=0, keepdims=True)                 # (1, TM)

    # exponent = c * ||x - y||^2 <= 0; clamp guards cancellation-induced positives.
    e = jnp.minimum(xy + cxn + cyn, 0.0)
    o_ref[...] = (sigma_var * jnp.exp(e)).astype(o_ref.dtype)


def rbf_kernel_reparametrised(X, Y=None, *, log_length_scale, sigma_var=1.0,
                              out_dtype=None):
    """JAX/Pallas equivalent of RBFKernelReparametrised.forward(X, Y, flatten=True)."""
    if Y is None:
        Y = X

    upranked = False
    if X.ndim == 2:
        X = X[None]
        upranked = True
    if Y.ndim == 2:
        Y = Y[None]
        upranked = True

    if X.shape[0] != Y.shape[0]:
        # Batch-broadcast (matches PyTorch broadcasting of mixed-rank inputs).
        B = max(X.shape[0], Y.shape[0])
        X = jnp.broadcast_to(X, (B,) + X.shape[1:])
        Y = jnp.broadcast_to(Y, (B,) + Y.shape[1:])

    B, n, d = X.shape
    _, m, dm = Y.shape
    assert d == dm, "X and Y must share the feature dimension"

    out_dtype = X.dtype if out_dtype is None else out_dtype

    # Parameters stay on device (no host sync; safe under jit).
    log_ls = jnp.asarray(log_length_scale, jnp.float32)
    c = -0.5 * jnp.exp(-log_ls)                               # -0.5 / length_scale
    params = jnp.stack([c, jnp.asarray(sigma_var, jnp.float32)])

    # MXU-native RHS layout: (B, d, m), lane-dense on m even for tiny d.
    Yt = jnp.swapaxes(Y, -1, -2)

    in_bytes = jnp.dtype(X.dtype).itemsize
    out_bytes = jnp.dtype(out_dtype).itemsize
    TN, TM = _choose_tiles(B, n, m, d, in_bytes, out_bytes)
    grid = (B, _cdiv(n, TN), _cdiv(m, TM))

    vmem_limit = int(min(48 << 20,
                         max(32 << 20,
                             2 * _tile_bytes(TN, TM, d, in_bytes, out_bytes))))

    cost = pl.CostEstimate(
        flops=2 * B * n * m * d + 5 * B * n * m,
        transcendentals=B * n * m,
        bytes_accessed=(B * n * d + B * m * d) * in_bytes + B * n * m * out_bytes,
    )

    out = pl.pallas_call(
        _rbf_kernel_body,
        out_shape=jax.ShapeDtypeStruct((B, n, m), out_dtype),
        grid_spec=pltpu.PrefetchScalarGridSpec(
            num_scalar_prefetch=0,
            grid=grid,
            in_specs=[
                pl.BlockSpec(memory_space=pltpu.MemorySpace.SMEM),       # params
                pl.BlockSpec((None, TN, d), lambda b, i, j: (b, i, 0)),  # X tile
                pl.BlockSpec((None, d, TM), lambda b, i, j: (b, 0, j)),  # Y^T tile
            ],
            out_specs=pl.BlockSpec((None, TN, TM), lambda b, i, j: (b, i, j)),
        ),
        compiler_params=pltpu.CompilerParams(
            dimension_semantics=("parallel", "parallel", "parallel"),
            vmem_limit_bytes=vmem_limit,
        ),
        cost_estimate=cost,
    )(params, X, Yt)

    if upranked:
        out = out[0]
    return out


def _reference(X, Y, log_length_scale, sigma_var=1.0):
    if Y is None:
        Y = X
    if X.ndim == 2:
        X = X[None]
    if Y.ndim == 2:
        Y = Y[None]
    length_scale = jnp.exp(jnp.asarray(log_length_scale, jnp.float32))
    diff = X[:, :, None, :] - Y[:, None, :, :]
    dists = jnp.sum(diff * diff, axis=-1)
    return sigma_var * jnp.exp(-0.5 * dists / length_scale)


if __name__ == "__main__":
    key = jax.random.PRNGKey(0)
    kx, ky = jax.random.split(key)

    # Deterministic "parameters" (module __init__ takes log_length_scale, sigma_var).
    log_length_scale = jnp.log(jnp.float32(1.5))
    sigma_var = 1.0

    # Small shapes consistent with the forward: X (batch, n, d), Y (batch, m, d).
    batch, n, m, d = 2, 16, 16, 8
    X = jax.random.normal(kx, (batch, n, d), dtype=jnp.float32)
    Y = jax.random.normal(ky, (batch, m, d), dtype=jnp.float32)

    # Batched case with explicit Y.
    K = jax.block_until_ready(
        rbf_kernel_reparametrised(X, Y, log_length_scale=log_length_scale,
                                  sigma_var=sigma_var))

    # Self-kernel, 2-D (unbatched) case -> output (n, n).
    K_self = jax.block_until_ready(
        rbf_kernel_reparametrised(X[0], None, log_length_scale=log_length_scale,
                                  sigma_var=sigma_var))

    # Ragged shapes (not tile multiples) exercise the masked boundary writes.
    n2, m2, d2 = 37, 200, 3
    X2 = jax.random.normal(kx, (1, n2, d2), dtype=jnp.float32)
    Y2 = jax.random.normal(ky, (1, m2, d2), dtype=jnp.float32)
    K2 = jax.block_until_ready(
        rbf_kernel_reparametrised(X2, Y2, log_length_scale=log_length_scale,
                                  sigma_var=sigma_var))

    ref = _reference(X, Y, log_length_scale, sigma_var)
    ref_self = _reference(X[0], None, log_length_scale, sigma_var)[0]
    ref2 = _reference(X2, Y2, log_length_scale, sigma_var)

    assert K.shape == (batch, n, m)
    assert K_self.shape == (n, n)
    assert K2.shape == (1, n2, m2)
    assert jnp.allclose(K, ref, atol=1e-4, rtol=1e-4)
    assert jnp.allclose(K_self, ref_self, atol=1e-4, rtol=1e-4)
    assert jnp.allclose(K2, ref2, atol=1e-4, rtol=1e-4)

    print("KERNEL_OK")
</pallas_src>

<mosaic_0001>
module attributes {stable_mosaic.version = 11 : i64} {
  func.func @_rbf_kernel_body(%arg0: i32, %arg1: i32, %arg2: i32, %arg3: memref<2xf32, #tpu.memory_space<smem>>, %arg4: memref<1x16x8xf32, #tpu.memory_space<vmem>>, %arg5: memref<1x8x16xf32, #tpu.memory_space<vmem>>, %arg6: memref<1x16x16xf32, #tpu.memory_space<vmem>>) attributes {dimension_semantics = [#tpu.dimension_semantics<parallel>, #tpu.dimension_semantics<parallel>, #tpu.dimension_semantics<parallel>], iteration_bounds = array<i64: 2, 1, 1>, scalar_prefetch = 0 : i64, scratch_operands = 0 : i64, tpu.core_type = #tpu.core_type<tc>, window_params = [{transform_indices = @transform_0, window_bounds = array<i64: 2>}, {transform_indices = @transform_1, window_bounds = array<i64: 1, 16, 8>}, {transform_indices = @transform_2, window_bounds = array<i64: 1, 8, 16>}, {transform_indices = @transform_3, window_bounds = array<i64: 1, 16, 16>}]} {
    %c0 = arith.constant 0 : index
    %0 = memref.load %arg3[%c0] : memref<2xf32, #tpu.memory_space<smem>>
    %c1 = arith.constant 1 : index
    %1 = memref.load %arg3[%c1] : memref<2xf32, #tpu.memory_space<smem>>
    %c0_0 = arith.constant 0 : index
    %c0_1 = arith.constant 0 : index
    %c0_2 = arith.constant 0 : index
    %2 = vector.load %arg4[%c0_0, %c0_1, %c0_2] : memref<1x16x8xf32, #tpu.memory_space<vmem>>, vector<1x16x8xf32>
    %3 = vector.shape_cast %2 : vector<1x16x8xf32> to vector<16x8xf32>
    %c0_3 = arith.constant 0 : index
    %c0_4 = arith.constant 0 : index
    %c0_5 = arith.constant 0 : index
    %4 = vector.load %arg5[%c0_3, %c0_4, %c0_5] : memref<1x8x16xf32, #tpu.memory_space<vmem>>, vector<1x8x16xf32>
    %5 = vector.shape_cast %4 : vector<1x8x16xf32> to vector<8x16xf32>
    %cst = arith.constant -2.000000e+00 : f32
    %6 = arith.mulf %cst, %0 : f32
    %7 = vector.broadcast %6 : f32 to vector<16x8xf32>
    %8 = arith.mulf %3, %7 : vector<16x8xf32>
    %cst_6 = arith.constant dense<0.000000e+00> : vector<16x16xf32>
    %9 = tpu.matmul %8, %5, %cst_6 {dimension_numbers = #tpu.dot_dimension_numbers<[1], [0], [0], [1], [0, 0, 1, 1], [], []>} : vector<16x8xf32>, vector<8x16xf32>, vector<16x16xf32> -> vector<16x16xf32>
    %10 = arith.mulf %3, %3 : vector<16x8xf32>
    %cst_7 = arith.constant dense<0.000000e+00> : vector<16xf32>
    %11 = vector.multi_reduction <add>, %10, %cst_7 [1] : vector<16x8xf32> to vector<16xf32>
    %12 = vector.shape_cast %11 : vector<16xf32> to vector<16x1xf32>
    %13 = vector.broadcast %0 : f32 to vector<16x1xf32>
    %14 = arith.mulf %13, %12 : vector<16x1xf32>
    %15 = arith.mulf %5, %5 : vector<8x16xf32>
    %cst_8 = arith.constant dense<0.000000e+00> : vector<16xf32>
    %16 = vector.multi_reduction <add>, %15, %cst_8 [0] : vector<8x16xf32> to vector<16xf32>
    %17 = vector.shape_cast %16 : vector<16xf32> to vector<1x16xf32>
    %18 = vector.broadcast %0 : f32 to vector<1x16xf32>
    %19 = arith.mulf %18, %17 : vector<1x16xf32>
    %20 = vector.broadcast %14 : vector<16x1xf32> to vector<16x16xf32>
    %21 = arith.addf %9, %20 : vector<16x16xf32>
    %22 = vector.broadcast %19 : vector<1x16xf32> to vector<16x16xf32>
    %23 = arith.addf %21, %22 : vector<16x16xf32>
    %cst_9 = arith.constant 0.000000e+00 : f32
    %24 = vector.broadcast %cst_9 : f32 to vector<16x16xf32>
    %25 = arith.minimumf %23, %24 : vector<16x16xf32>
    %26 = math.exp %25 : vector<16x16xf32>
    %27 = vector.broadcast %1 : f32 to vector<16x16xf32>
    %28 = arith.mulf %27, %26 : vector<16x16xf32>
    %c0_10 = arith.constant 0 : index
    %c0_11 = arith.constant 0 : index
    %c0_12 = arith.constant 0 : index
    %29 = vector.load %arg6[%c0_10, %c0_11, %c0_12] : memref<1x16x16xf32, #tpu.memory_space<vmem>>, vector<1x16x16xf32>
    %30 = vector.shape_cast %29 : vector<1x16x16xf32> to vector<16x16xf32>
    %31 = vector.shape_cast %28 : vector<16x16xf32> to vector<1x16x16xf32>
    tpu.vector_store %arg6[%c0_10, %c0_11, %c0_12], %31 {strides = array<i32>} : memref<1x16x16xf32, #tpu.memory_space<vmem>>, vector<1x16x16xf32>,
    return
  }
  func.func @transform_0(%arg0: i32, %arg1: i32, %arg2: i32) -> i32 {
    %c0_i32 = arith.constant 0 : i32
    %c0_i32_0 = arith.constant 0 : i32
    return %c0_i32 : i32
  }
  func.func @transform_1(%arg0: i32, %arg1: i32, %arg2: i32) -> (i32, i32, i32) {
    %c0_i32 = arith.constant 0 : i32
    %c0_i32_0 = arith.constant 0 : i32
    return %arg0, %arg1, %c0_i32 : i32, i32, i32
  }
  func.func @transform_2(%arg0: i32, %arg1: i32, %arg2: i32) -> (i32, i32, i32) {
    %c0_i32 = arith.constant 0 : i32
    %c0_i32_0 = arith.constant 0 : i32
    return %arg0, %c0_i32, %arg2 : i32, i32, i32
  }
  func.func @transform_3(%arg0: i32, %arg1: i32, %arg2: i32) -> (i32, i32, i32) {
    %c0_i32 = arith.constant 0 : i32
    return %arg0, %arg1, %arg2 : i32, i32, i32
  }
}

</mosaic_0001>

<bundles_post_ra>
// kernel: tpu_custom_call.1
= control target key start
LH: loop header
LB: loop body
LE: loop exit
PB: predicated region body
PF: predicated region fallthrough
CT: control target
= control target key end

     0   :  { %8 = vsyncpa [#allocation4], 0  ;;  %s873_s0 = inlined_call_operand.vmem [shape: f32[2], index: 0, kind: input, shape index: {}]   ;;  %s874_s1 = inlined_call_operand.vmem [shape: f32[2,16,8], index: 1, kind: input, shape index: {}]   ;;  %s875_s2 = inlined_call_operand.vmem [shape: f32[2,8,16], index: 2, kind: input, shape index: {}]   ;;  %s876_s3 = inlined_call_operand.hbm [shape: f32[2,16,16], index: 3, kind: output, shape index: {}]  }
   0x1   :  { %9 = vsyncpa [#allocation3], 0 }
   0x2   :  { %11 = vsyncpa [#allocation3 + $0x1], 0  ;;  %s727_s12 = smov 0   ;;  %s729_s13 = smov 0  }
   0x3   :  { %s731_s14 = smov 0   ;;  %s733_s15 = smov 0  }
   0x4   :  { %s735_s16 = smov 0   ;;  %s737_s17 = smov 0  }
   0x5 LB: > { %s503_s18 = sadd.s32 4294967295, %s701_s17   ;;  %s504_s19 = sadd.s32 4294967294, %s701_s17   ;;  %s701_s17 = sphi %s737_s17, %s17_s17   ;;  %s697_s16 = sphi %s735_s16, %s885_s16   ;;  %s693_s15 = sphi %s733_s15, %s884_s15   ;;  %s689_s14 = sphi %s731_s14, %s883_s14   ;;  %s685_s13 = sphi %s729_s13, %s882_s13   ;;  %s681_s12 = sphi %s727_s12, %s881_s12  }
   0x6   : > { %s36_s20 = sadd.s32 1, %s697_s16  ;;  %s124_s21 = sadd.s32 1, %s689_s14 }
   0x7   : > { %p38_p0 = scmp.ge.s32.totalorder %s36_s20, 2  ;;  %p134_p1 = scmp.ne.s32.totalorder %s689_s14, %s685_s13 }
   0x8   : > { %p135_p2 = scmp.eq.s32.totalorder %s503_s18, 1  ;;  %p140_p3 = scmp.ne.s32.totalorder %s685_s13, %s681_s12 }
   0x9   : > { %s887_s20 = smov (%p38_p0, %s36_s20), 0  ;;  %p141_p5 = scmp.eq.s32.totalorder %s504_s19, 1 }
   0xa   : > { %p767_p4 = por %p135_p2, %p134_p1  ;;  %s117_s23 = ssub.s32 %s697_s16, %s887_s20 }
   0xb   : > { %p505_p6 = scmp.ge.s32.totalorder %s701_s17, 1  ;;  %p122_p7 = scmp.eq.s32.totalorder %s117_s23, 0 }
   0xc   : > { %p774_p8 = por %p141_p5, %p140_p3  ;;  %p148_p9 = scmp.lt.s32.totalorder %s701_s17, 3 }
   0xd   : > { %s780_s25 = scalar_select %p122_p7, %s689_s14, %s124_s21  }
   0xe   : > { %p782_p10 = pnand %p505_p6, %p148_p9  ;;  %p786_p11 = scmp.eq.s32.totalorder %s503_s18, 0 }
   0xf   : > { %s161_s30 = sshll.u32 %s873_s0, 4  ;;  %s162_s30 = int_to_ptr.vmem [resolvable:$true] %s161_s30 }
  0x10   : > { %p538_p12 = pneg %p782_p10  ;;  %s604_s4 = scalar_lea.vmem %s162_s30, 16 }
  0x11   : > { %p605_p0 = scmp.ne.s32.totalorder %s162_s30, %s604_s4  ;;  %p612_p5 = scmp.lt.s32.totalorder %s162_s30, %s162_s30 }
  0x12   : > { %p539_p13 = pnand %p786_p11, %p538_p12  ;;  %p613_p6 = scmp.lt.s32.totalorder %s604_s4, %s604_s4 }
  0x14   : > { %p606_p1 = pneg %p539_p13  ;;  %p614_p7 = por %p613_p6, %p612_p5 }
  0x16   : > { %p607_p2 = pnand %p606_p1, %p605_p0 }
  0x18   : > { %p608_p3 = pneg %p607_p2 }
  0x1a   : > { %p615_p9 = pnand %p614_p7, %p608_p3 }
  0x1c   : > { %618 = shalt.err (!%p615_p9)
}
  0x1d   : > { %s703_s5 = smov [#allocation2]   ;;  %197 = sbr.rel (%p782_p10) target bundleno = 300 (0x12c), region = 32 }
  0x1e   : > { %541 = dma.vmem_to_smem (!%p539_p13), %s162_s30, 16, %s703_s5, [#allocation4]  }
  0x24   : > { %672 = dma.done.wait (%p786_p11), [#allocation4], 16  }
  0x25   : > { %674 = vsyncadd (%p786_p11), [#allocation4], 4294967280 }
  0x26   : > { %203 = sfence }
  0x27   : > { %p234_p12 = scmp.lt.s32.totalorder %s693_s15, 1  ;;  %s804_s6 = sld [smem:[#allocation2]]  ;;  %vm262_vm0 = vcmask 64512   ;;  %vm273_vm1 = vcmask 130048  }
  0x28   : > { %s230_s27 = sand.u32 1, %s685_s13   ;;  %s514_s28 = sld [smem:[#allocation2 + $0x1]] }
  0x29   : > { %s235_s7 = scalar_select %p234_p12, %s693_s15, 1 }
  0x2a   : > { %s510_s29 = sshll.u32 %s230_s27, 4  ;;  %s523_s30 = sshll.u32 %s693_s15, 8 }
  0x2b   : > { %s513_s8 = sshll.u32 %s235_s7, 3  ;;  %s522_s9 = sshll.u32 %s235_s7, 4 }
  0x2c   : > { %s249_s18 = scalar_lea.vmem %s875_s2, %s513_s8  ;;  %s241_s23 = scalar_lea.vmem %s874_s1, %s522_s9 }
  0x2d   : > { %v255_v0 = vld [vmem:[%s249_s18] sm:$0xff]  ;;  %v254_v2 = vld [vmem:[%s241_s23 + $0x8] sm:$0xff]  ;;  %s256_s26 = smul.f32 -2.0, %s804_s6  ;;  %v269_v18 = vstv %s804_s6  ;;  %s232_s4 = scalar_lea.vmem [#allocation5], %s510_s29 }
  0x2e   : > { %v253_v1 = vld [vmem:[%s241_s23] sm:$0xff]  ;;  %527 = vmatprep.subr.mxu0 %v255_v0  ;;  %v261_v4 = vmul.f32 %v254_v2, %v254_v2  ;;  %v272_v6 = vmul.f32 %v255_v0, %v255_v0  ;;  %v371_v34 = vstv %s514_s28  ;;  %s393_s5 = sshll.u32 %s232_s4, 4  ;;  %s821_s8 = scalar_lea.hbm %s876_s3, %s523_s30  ;;  %s823_s5 = int_to_ptr.vmem [resolvable:$true] %s393_s5 }
  0x2f   : > { %v260_v3 = vmul.f32 %v253_v1, %v253_v1  ;;  %528 = vmatpush3.msra.mxu0 %v255_v0  ;;  %v257_v5 = vstv %s256_s26  ;;  %s827_s15 = scalar_lea.sflag [#allocation3], %s230_s27  ;;  %s619_s9 = scalar_lea.vmem %s823_s5, 256 }
  0x30   : > { %v258_v7 = vmul.f32 %v257_v5, %v253_v1  ;;  %v259_v8 = vmul.f32 %v257_v5, %v254_v2  ;;  %v266_v10 = vsel %vm262_vm0, %v261_v4, 0.0  ;;  %v274_v11 = vsel %vm273_vm1, %v272_v6, 0.0  ;;  %p620_p10 = scmp.ne.s32.totalorder %s823_s5, %s619_s9  ;;  %s704_s10 = smov [#allocation5]  }
  0x31   : > { %v263_v9 = vsel %vm262_vm0, %v260_v3, 0.0  ;;  %v275_v12 = vrot.slane %v274_v11, 4  ;;  %s623_s11 = sshll.u32 %s704_s10, 4  ;;  %s624_s11 = int_to_ptr.vmem [resolvable:$false] %s623_s11 }
  0x32   : > { %264 = vadd.xlane.f32.xlu0 %v263_v9  ;;  %529 = vmatprep.mubr.msk.f32.mxu0 %vm262_vm0, %v258_v7  ;;  %p621_p11 = pnand %p620_p10, %p767_p4  ;;  %s625_s18 = scalar_lea.vmem %s624_s11, 512 }
  0x33   : > { %530 = vmatmul.mubr.msk.f32.vlgmr.msra.gmra.mrb[0].mxu0 %vm262_vm0, %v259_v8  ;;  %v276_v13 = vadd.f32 %v275_v12, %v274_v11  ;;  %p626_p0 = scmp.lt.s32.totalorder %s823_s5, %s624_s11  ;;  %p627_p1 = scmp.lt.s32.totalorder %s625_s18, %s619_s9 }
  0x34   : > { %p622_p13 = pneg %p621_p11 }
  0x35   : > { %v277_v14 = vrot.slane %v276_v13, 2  ;;  %p628_p2 = por %p627_p1, %p626_p0 }
  0x36   : > { %267 = vadd.xlane.f32.xlu0 %v266_v10 }
  0x37   : > { %v278_v15 = vadd.f32 %v277_v14, %v276_v13  ;;  %p629_p3 = pnand %p628_p2, %p622_p13 }
  0x39   : > { %v279_v16 = vrot.slane %v278_v15, 1 }
  0x3b   : > { %v280_v17 = vadd.f32 %v279_v16, %v278_v15 }
  0x3d   : > { %v281_v19 = vmul.f32 %v280_v17, %v269_v18 }
  0xbf   : > { %v265_v20 = vpop.xlane.xlu0 %264 }
  0xc0   : > { %v270_v23 = vmul.f32 %v269_v18, %v265_v20 }
  0xc3   : > { %v268_v21 = vpop.xlane.xlu0 %267 }
  0xc4   : > { %v271_v22 = vmul.f32 %v269_v18, %v268_v21 }
 0x106   : > { %v531_v24 = vpop.f32.mrb[0].mxu0 }
 0x107   : > { %v360_v25 = vadd.f32 %v531_v24, %v271_v22  ;;  %v354_v26 = vpop.f32.mrb[1].mxu0 }
 0x108   : > { %v355_v27 = vadd.f32 %v354_v26, %v270_v23 }
 0x109   : > { %v364_v28 = vadd.f32 %v360_v25, %v281_v19 }
 0x10a   : > { %v363_v29 = vadd.f32 %v355_v27, %v281_v19 }
 0x10b   : > { %v366_v30 = vmin.f32 %v364_v28, 0.0 }
 0x10c   : > { %v365_v31 = vmin.f32 %v363_v29, 0.0 }
 0x10d   : > { %v369_v32 = vmul.f32 1.442695, %v366_v30 }
 0x10e   : > { %v367_v33 = vmul.f32 1.442695, %v365_v31 }
 0x10f   : > { %600 = vpow2.f32 %v369_v32 }
 0x110   : > { %602 = vpow2.f32 %v367_v33 }
 0x119   : > { %v601_v35 = vpop.eup %600 }
 0x11a   : > { %v603_v36 = vpop.eup %602  ;;  %v373_v37 = vmul.f32 %v601_v35, %v371_v34 }
 0x11b   : > { %v372_v38 = vmul.f32 %v603_v36, %v371_v34 }
 0x11c   : > { %375 = vst.msk [vmem:[%s232_s4 + $0x8] sm:$0xff] %vm273_vm1, %v373_v37 }
 0x11d   : > { %374 = vst.msk [vmem:[%s232_s4] sm:$0xff] %vm273_vm1, %v372_v38 }
 0x11e   : > { %632 = shalt.err (!%p629_p3)
}
 0x11f   : > { %s633_s19 = scalar_lea.hbm %s821_s8, 256  ;;  %s637_s26 = scalar_lea.hbm %s876_s3, 512 }
 0x120   : > { %p634_p5 = scmp.ne.s32.totalorder %s821_s8, %s633_s19  ;;  %p638_p9 = scmp.lt.u32.totalorder %s821_s8, %s876_s3 }
 0x121   : > { %p639_p12 = scmp.lt.u32.totalorder %s637_s26, %s633_s19  ;;  %p641_p11 = scmp.lt.u32.totalorder %s633_s19, %s821_s8 }
 0x122   : > { %p635_p6 = pnand %p634_p5, %p767_p4 }
 0x123   : > { %p640_p10 = por %p639_p12, %p638_p9 }
 0x124   : > { %p636_p7 = pneg %p635_p6 }
 0x125   : > { %p642_p13 = por %p641_p11, %p640_p10 }
 0x127   : > { %p643_p0 = pnand %p642_p13, %p636_p7 }
 0x129   : > { %646 = shalt.err (!%p643_p0)
}
 0x12a   : > { %s705_s29 = smov 128   ;;  %s706_s30 = smov 8  }
 0x12b   : > { %536 = dma.vmem_to_hbm [thread:$0]  (%p767_p4), %s823_s5, 256, %s821_s8, %s827_s15, %s705_s29, %s705_s29, %s706_s30  }
 0x12c PF: > { %p548_p1 = scmp.ge.s32.totalorder %s701_s17, 2  ;;  %s408_s4 = sand.u32 1, %s681_s12  }
 0x12d   : > { %s409_s6 = scalar_lea.sflag [#allocation3], %s408_s4 }
 0x12e   : > { %p543_p2 = pnand %p548_p1, %p774_p8 }
 0x130   : > { %676 = dma.done.wait (!%p543_p2), %s409_s6, 256  }
 0x131   : > { %678 = vsyncadd (!%p543_p2), %s409_s6, 4294967040  ;;  %s17_s17 = sadd.s32 1, %s701_s17   ;;  %s881_s12 = smov %s685_s13 }
 0x132   : > { %p14_p3 = scmp.ge.s32.totalorder %s17_s17, 4   ;;  %s882_s13 = smov %s689_s14 }
 0x133   : > { %s883_s14 = smov %s780_s25  ;;  %s884_s15 = smov %s697_s16 }
 0x134   : > { %s885_s16 = smov %s887_s20  ;;  %16 = sbr.rel (!%p14_p3) target bundleno = 5 (0x5), region = 75 }
 0x13b   :  { %414 = vsyncpa [#allocation3], 1 }
 0x13c   :  { %416 = vsyncpa [#allocation3 + $0x1], 1 }
 0x13d   :  { %417 = vsyncpa [#allocation4], 1 }
 0x13e   :  { %419 = vsyncpa [#allocation4 + $0x1], 1 }

</bundles_post_ra>
